<compile_context>
chip_gen: v7x
topology: tpu7x:2x2x1
jax: 0.10.0
libtpu: 0.0.40
codegen_flags: <defaults>
</compile_context>

<pallas_src>
import jax
import jax.numpy as jnp
from jax import lax
from jax.experimental import pallas as pl
from jax.experimental.pallas import tpu as pltpu

IN_DIM = 10
HIDDEN_DIM = 50
OUT_DIM = 1
DEFAULT_TILE_B = 2048   # multiple of 128; tiny VMEM footprint even double-buffered


def _round_up(x, m):
    return (x + m - 1) // m * m


def mlp_kernel(x_ref, w1_ref, b1_ref, w2_ref, b2_ref, o_ref):
    # Read parameters once per grid step (no re-broadcast inside any loop).
    w1 = w1_ref[...]            # (HIDDEN, IN)   -- PyTorch [out, in] layout
    b1 = b1_ref[...]            # (HIDDEN, 1)
    w2 = w2_ref[...]            # (OUT, HIDDEN)
    b2 = b2_ref[0]              # scalar fc2 bias from SMEM

    x = x_ref[...]              # (TILE_B, IN)

    # fc1 + ReLU:  h^T = relu(W1 @ x^T + b1)  -- NT matmul, no explicit transpose.
    ht = lax.dot_general(w1, x, (((1,), (1,)), ((), ())),
                         preferred_element_type=jnp.float32)   # (HIDDEN, TILE_B)
    ht = jnp.maximum(ht + b1, 0.0)

    # fc2:  y^T = W2 @ h^T + b2  -> (1, TILE_B): lane-dense store.
    yt = jnp.dot(w2, ht, preferred_element_type=jnp.float32)
    o_ref[...] = (yt + b2).astype(o_ref.dtype)


def simple_model_forward(x, w1, b1, w2, b2, *, tile_b=DEFAULT_TILE_B):
    """Forward pass of SimpleModel.

    x:  (B, 10) float32
    w1: (50, 10), b1: (50,)   -- PyTorch nn.Linear layout [out, in]
    w2: (1, 50),  b2: (1,)
    returns (B, 1) float32
    """
    batch = x.shape[0]

    # Tile size: multiple of 128 (lane-dense output blocks), capped by batch.
    tile_b = max(128, (min(tile_b, _round_up(batch, 128)) // 128) * 128)
    padded_b = _round_up(batch, tile_b)
    if padded_b != batch:
        x = jnp.pad(x, ((0, padded_b - batch), (0, 0)))
    n_tiles = padded_b // tile_b

    b1_col = b1.reshape(HIDDEN_DIM, 1).astype(jnp.float32)
    b2_s = b2.reshape(OUT_DIM).astype(jnp.float32)

    flops = 2 * padded_b * (IN_DIM * HIDDEN_DIM + HIDDEN_DIM * OUT_DIM)
    bytes_accessed = 4 * (padded_b * (IN_DIM + OUT_DIM)
                          + HIDDEN_DIM * IN_DIM + HIDDEN_DIM
                          + OUT_DIM * HIDDEN_DIM + OUT_DIM)

    yt = pl.pallas_call(
        mlp_kernel,
        out_shape=jax.ShapeDtypeStruct((1, padded_b), x.dtype),
        grid=(n_tiles,),
        in_specs=[
            pl.BlockSpec((tile_b, IN_DIM), lambda i: (i, 0)),        # x: batch-tiled
            pl.BlockSpec((HIDDEN_DIM, IN_DIM), lambda i: (0, 0)),    # w1: VMEM-resident
            pl.BlockSpec((HIDDEN_DIM, 1), lambda i: (0, 0)),         # b1: VMEM-resident
            pl.BlockSpec((OUT_DIM, HIDDEN_DIM), lambda i: (0, 0)),   # w2: VMEM-resident
            pl.BlockSpec(memory_space=pltpu.MemorySpace.SMEM),       # b2: SMEM scalar
        ],
        out_specs=pl.BlockSpec((1, tile_b), lambda i: (0, i)),       # lane-dense y^T
        compiler_params=pltpu.CompilerParams(
            dimension_semantics=("parallel",)),                      # megacore on v7x
        cost_estimate=pl.CostEstimate(flops=flops, transcendentals=0,
                                      bytes_accessed=bytes_accessed),
    )(x, w1, b1_col, w2, b2_s)

    # (1, padded_B) -> (padded_B, 1); drop padding rows.
    return yt.reshape(padded_b, OUT_DIM)[:batch]


def init_params(key):
    """Deterministic init mimicking nn.Linear's U(-1/sqrt(fan_in), 1/sqrt(fan_in)).
    Stored in PyTorch layout: w[out, in], b[out]."""
    k1, k2, k3, k4 = jax.random.split(key, 4)
    lim1 = 1.0 / jnp.sqrt(IN_DIM)
    lim2 = 1.0 / jnp.sqrt(HIDDEN_DIM)
    w1 = jax.random.uniform(k1, (HIDDEN_DIM, IN_DIM), jnp.float32, -lim1, lim1)
    b1 = jax.random.uniform(k2, (HIDDEN_DIM,), jnp.float32, -lim1, lim1)
    w2 = jax.random.uniform(k3, (OUT_DIM, HIDDEN_DIM), jnp.float32, -lim2, lim2)
    b2 = jax.random.uniform(k4, (OUT_DIM,), jnp.float32, -lim2, lim2)
    return w1, b1, w2, b2


def reference_forward(x, w1, b1, w2, b2):
    h = jnp.maximum(x @ w1.T + b1, 0.0)
    return h @ w2.T + b2


if __name__ == "__main__":
    key = jax.random.PRNGKey(0)
    kx, kx2, kp = jax.random.split(key, 3)

    w1, b1, w2, b2 = init_params(kp)

    # Primary small check (batch=8).
    x = jax.random.normal(kx, (8, IN_DIM), dtype=jnp.float32)
    out = jax.block_until_ready(simple_model_forward(x, w1, b1, w2, b2))
    ref = reference_forward(x, w1, b1, w2, b2)
    assert out.shape == (8, OUT_DIM), out.shape
    assert jnp.allclose(out, ref, atol=1e-5, rtol=1e-5), "mismatch vs reference (B=8)"

    # Secondary check exercising the batch grid + padding (non-multiple of 128).
    x2 = jax.random.normal(kx2, (300, IN_DIM), dtype=jnp.float32)
    out2 = jax.block_until_ready(
        simple_model_forward(x2, w1, b1, w2, b2, tile_b=128))
    ref2 = reference_forward(x2, w1, b1, w2, b2)
    assert out2.shape == (300, OUT_DIM), out2.shape
    assert jnp.allclose(out2, ref2, atol=1e-5, rtol=1e-5), "mismatch vs reference (B=300)"

    print("KERNEL_OK")
</pallas_src>

<mosaic_0001>
module attributes {stable_mosaic.version = 11 : i64} {
  func.func @mlp_kernel(%arg0: i32, %arg1: memref<128x10xf32, #tpu.memory_space<vmem>>, %arg2: memref<50x10xf32, #tpu.memory_space<vmem>>, %arg3: memref<50x1xf32, #tpu.memory_space<vmem>>, %arg4: memref<1x50xf32, #tpu.memory_space<vmem>>, %arg5: memref<1xf32, #tpu.memory_space<smem>>, %arg6: memref<1x128xf32, #tpu.memory_space<vmem>>) attributes {dimension_semantics = [#tpu.dimension_semantics<parallel>], iteration_bounds = array<i64: 1>, scalar_prefetch = 0 : i64, scratch_operands = 0 : i64, tpu.core_type = #tpu.core_type<tc>, window_params = [{transform_indices = @transform_0, window_bounds = array<i64: 128, 10>}, {pipeline_mode = #tpu.pipeline_mode<synchronous>, transform_indices = @transform_1, window_bounds = array<i64: 50, 10>}, {pipeline_mode = #tpu.pipeline_mode<synchronous>, transform_indices = @transform_2, window_bounds = array<i64: 50, 1>}, {pipeline_mode = #tpu.pipeline_mode<synchronous>, transform_indices = @transform_3, window_bounds = array<i64: 1, 50>}, {transform_indices = @transform_4, window_bounds = array<i64: 1>}, {transform_indices = @transform_5, window_bounds = array<i64: 1, 128>}]} {
    %c0 = arith.constant 0 : index
    %c0_0 = arith.constant 0 : index
    %0 = vector.load %arg2[%c0, %c0_0] : memref<50x10xf32, #tpu.memory_space<vmem>>, vector<50x10xf32>
    %c0_1 = arith.constant 0 : index
    %c0_2 = arith.constant 0 : index
    %1 = vector.load %arg3[%c0_1, %c0_2] : memref<50x1xf32, #tpu.memory_space<vmem>>, vector<50x1xf32>
    %c0_3 = arith.constant 0 : index
    %c0_4 = arith.constant 0 : index
    %2 = vector.load %arg4[%c0_3, %c0_4] : memref<1x50xf32, #tpu.memory_space<vmem>>, vector<1x50xf32>
    %c0_5 = arith.constant 0 : index
    %3 = memref.load %arg5[%c0_5] : memref<1xf32, #tpu.memory_space<smem>>
    %c0_6 = arith.constant 0 : index
    %c0_7 = arith.constant 0 : index
    %4 = vector.load %arg1[%c0_6, %c0_7] : memref<128x10xf32, #tpu.memory_space<vmem>>, vector<128x10xf32>
    %cst = arith.constant dense<0.000000e+00> : vector<50x128xf32>
    %5 = tpu.matmul %0, %4, %cst {dimension_numbers = #tpu.dot_dimension_numbers<[1], [1], [0], [0], [0, 0, 1, 0], [], []>} : vector<50x10xf32>, vector<128x10xf32>, vector<50x128xf32> -> vector<50x128xf32>
    %6 = vector.broadcast %1 : vector<50x1xf32> to vector<50x128xf32>
    %7 = arith.addf %5, %6 : vector<50x128xf32>
    %cst_8 = arith.constant 0.000000e+00 : f32
    %8 = vector.broadcast %cst_8 : f32 to vector<50x128xf32>
    %9 = arith.maximumf %7, %8 : vector<50x128xf32>
    %cst_9 = arith.constant dense<0.000000e+00> : vector<1x128xf32>
    %10 = tpu.matmul %2, %9, %cst_9 {dimension_numbers = #tpu.dot_dimension_numbers<[1], [0], [0], [1], [0, 0, 1, 1], [], []>} : vector<1x50xf32>, vector<50x128xf32>, vector<1x128xf32> -> vector<1x128xf32>
    %11 = vector.broadcast %3 : f32 to vector<1x128xf32>
    %12 = arith.addf %10, %11 : vector<1x128xf32>
    %c0_10 = arith.constant 0 : index
    %c0_11 = arith.constant 0 : index
    %13 = vector.load %arg6[%c0_10, %c0_11] : memref<1x128xf32, #tpu.memory_space<vmem>>, vector<1x128xf32>
    tpu.vector_store %arg6[%c0_10, %c0_11], %12 {strides = array<i32>} : memref<1x128xf32, #tpu.memory_space<vmem>>, vector<1x128xf32>,
    return
  }
  func.func @transform_0(%arg0: i32) -> (i32, i32) {
    %c0_i32 = arith.constant 0 : i32
    %c0_i32_0 = arith.constant 0 : i32
    return %arg0, %c0_i32 : i32, i32
  }
  func.func @transform_1(%arg0: i32) -> (i32, i32) {
    %c0_i32 = arith.constant 0 : i32
    %c0_i32_0 = arith.constant 0 : i32
    %c0_i32_1 = arith.constant 0 : i32
    return %c0_i32, %c0_i32_0 : i32, i32
  }
  func.func @transform_2(%arg0: i32) -> (i32, i32) {
    %c0_i32 = arith.constant 0 : i32
    %c0_i32_0 = arith.constant 0 : i32
    %c0_i32_1 = arith.constant 0 : i32
    return %c0_i32, %c0_i32_0 : i32, i32
  }
  func.func @transform_3(%arg0: i32) -> (i32, i32) {
    %c0_i32 = arith.constant 0 : i32
    %c0_i32_0 = arith.constant 0 : i32
    %c0_i32_1 = arith.constant 0 : i32
    return %c0_i32, %c0_i32_0 : i32, i32
  }
  func.func @transform_4(%arg0: i32) -> i32 {
    %c0_i32 = arith.constant 0 : i32
    %c0_i32_0 = arith.constant 0 : i32
    return %c0_i32 : i32
  }
  func.func @transform_5(%arg0: i32) -> (i32, i32) {
    %c0_i32 = arith.constant 0 : i32
    %c0_i32_0 = arith.constant 0 : i32
    return %c0_i32, %arg0 : i32, i32
  }
}

</mosaic_0001>

<bundles_post_ra>
// kernel: tpu_custom_call.1
= control target key start
LH: loop header
LB: loop body
LE: loop exit
PB: predicated region body
PF: predicated region fallthrough
CT: control target
= control target key end

     0   :  { %vm89_vm0 = vcmask 80896   ;;  %v558_v2 = vmov 0.0|0.0   ;;  %vm559_vm2 = vmmov 0   ;;  %v560_v5 = vmov 0.0   ;;  %s758_s0 = inlined_call_operand.vmem [shape: f32[128,10], index: 0, kind: input, shape index: {}]   ;;  %s759_s1 = inlined_call_operand.vmem [shape: f32[50,10], index: 1, kind: input, shape index: {}]   ;;  %s760_s2 = inlined_call_operand.vmem [shape: f32[50,1], index: 2, kind: input, shape index: {}]   ;;  %s761_s3 = inlined_call_operand.vmem [shape: f32[1,50], index: 3, kind: input, shape index: {}]   ;;  %s762_s4 = inlined_call_operand.<no memory space> [shape: f32[1], index: 4, kind: input, shape index: {}]   ;;  %s763_s5 = inlined_call_operand.hbm [shape: f32[1,128], index: 5, kind: output, shape index: {}]  }
   0x1   :  { %v38_v0 = vld [vmem:[%s758_s0] sm:$0xff]  ;;  %v39_v1 = vld [vmem:[%s758_s0 + $0x8] sm:$0xff]  ;;  %486 = vmatprep.subr.bf16.mxu0 %v558_v2  ;;  %vm602_vm1 = vmpackc.low %vm89_vm0, %vm89_vm0  ;;  %518 = vmatprep.subr.bf16.mxu1 %v558_v2  ;;  %v561_v6 = vmov 0  }
   0x2   :  { %v487_v3 = vpack.c.bf16 %v39_v1, %v38_v0  ;;  %448 = vmatprep.mubr.msk.f32.mxu0 %vm559_vm2, %v560_v5  ;;  %532 = vset.pattern.permute.xlu0 %v561_v6  ;;  %v40_v7 = vld [vmem:[%s758_s0 + $0x10] sm:$0xff]  ;;  %v41_v8 = vld [vmem:[%s758_s0 + $0x18] sm:$0xff]  ;;  %v29_v10 = vld [vmem:[%s760_s2] sm:$0xff] }
   0x3   :  { %533 = vset.pattern.permute.xlu1 %v561_v6  ;;  %483 = vmatprep.mubr.msk.f32.mxu1 %vm559_vm2, %v560_v5  ;;  %v491_v9 = vpack.c.bf16 %v41_v8, %v40_v7  ;;  %v31_v11 = vld [vmem:[%s760_s2 + $0x10] sm:$0xff]  ;;  %v30_v12 = vld [vmem:[%s760_s2 + $0x8] sm:$0xff]  ;;  %v32_v13 = vld [vmem:[%s760_s2 + $0x18] sm:$0xff] }
   0x4   :  { %489 = vmatpush3.bf16.xpose.msk.msra.mxu0 %vm602_vm1, %v487_v3  ;;  %56 = vperm.xlu0 %532, %v29_v10  }
   0x5   :  { %490 = vmatprep.subr.bf16.mxu0 %v558_v2  ;;  %66 = vperm.xlu1 %533, %v31_v11  }
   0x6   :  { %11 = vsyncpa [#allocation4], 0  ;;  %v42_v14 = vld [vmem:[%s758_s0 + $0x20] sm:$0xff]  ;;  %v43_v15 = vld [vmem:[%s758_s0 + $0x28] sm:$0xff]  ;;  %vm271_vm3 = vcmask 1041408   ;;  %vm267_vm4 = vcmask 408576  }
   0x7   :  { %v33_v16 = vld [vmem:[%s760_s2 + $0x20] sm:$0xff]  ;;  %v34_v17 = vld [vmem:[%s760_s2 + $0x28] sm:$0xff]  ;;  %v495_v18 = vpack.c.bf16 %v43_v15, %v42_v14  ;;  %v35_v19 = vld [vmem:[%s760_s2 + $0x30] sm:$0x3]  ;;  %s562_s28 = smov [#allocation3]  }
   0x8   :  { %61 = vperm.xlu0 %532, %v30_v12   ;;  %v44_v20 = vld [vmem:[%s758_s0 + $0x30] sm:$0xff]  ;;  %v45_v21 = vld [vmem:[%s758_s0 + $0x38] sm:$0xff]  ;;  %v46_v23 = vld [vmem:[%s758_s0 + $0x40] sm:$0xff]  ;;  %s352_s29 = sshll.u32 %s562_s28, 4  ;;  %s353_s29 = int_to_ptr.vmem [resolvable:$true] %s352_s29 }
   0x9   :  { %71 = vperm.xlu1 %533, %v32_v13   ;;  %v499_v22 = vpack.c.bf16 %v45_v21, %v44_v20  ;;  %v47_v24 = vld [vmem:[%s758_s0 + $0x48] sm:$0xff]  ;;  %v48_v26 = vld [vmem:[%s758_s0 + $0x50] sm:$0xff]  ;;  %v49_v27 = vld [vmem:[%s758_s0 + $0x58] sm:$0xff]  ;;  %s534_s30 = scalar_lea.vmem %s353_s29, 16  ;;  %s538_s6 = scalar_lea.vmem %s353_s29, 32 }
   0xa   :  { %v503_v25 = vpack.c.bf16 %v47_v24, %v46_v23  ;;  %v507_v28 = vpack.c.bf16 %v49_v27, %v48_v26  ;;  %v50_v29 = vld [vmem:[%s758_s0 + $0x60] sm:$0xff]  ;;  %v51_v30 = vld [vmem:[%s758_s0 + $0x68] sm:$0xff]  ;;  %v52_v32 = vld [vmem:[%s758_s0 + $0x70] sm:$0xff]  ;;  %p535_p0 = scmp.ne.s32.totalorder %s353_s29, %s534_s30  ;;  %p539_p1 = scmp.lt.s32.totalorder %s353_s29, %s353_s29 }
   0xb   :  { %v511_v31 = vpack.c.bf16 %v51_v30, %v50_v29  ;;  %v53_v33 = vld [vmem:[%s758_s0 + $0x78] sm:$0xff]  ;;  %v22_v35 = vld [vmem:[%s759_s1] sm:$0xff]  ;;  %v23_v36 = vld [vmem:[%s759_s1 + $0x8] sm:$0xff]  ;;  %p540_p2 = scmp.lt.s32.totalorder %s538_s6, %s534_s30 }
   0xc   :  { %493 = vmatpush3.bf16.xpose.msk.msra.mxu0 %vm602_vm1, %v491_v9  ;;  %76 = vperm.xlu0 %532, %v33_v16   ;;  %v515_v34 = vpack.c.bf16 %v53_v33, %v52_v32  ;;  %v24_v37 = vld [vmem:[%s759_s1 + $0x10] sm:$0xff]  ;;  %v25_v38 = vld [vmem:[%s759_s1 + $0x18] sm:$0xff]  ;;  %v26_v39 = vld [vmem:[%s759_s1 + $0x20] sm:$0xff] }
   0xd   :  { %494 = vmatprep.subr.bf16.mxu0 %v558_v2  ;;  %81 = vperm.xlu1 %533, %v34_v17   ;;  %v27_v40 = vld [vmem:[%s759_s1 + $0x28] sm:$0xff]  ;;  %v28_v41 = vld [vmem:[%s759_s1 + $0x30] sm:$0x3]  ;;  %p541_p3 = por %p540_p2, %p539_p1 }
   0xf   :  { %p542_p4 = pnand %p541_p3, %p535_p0 }
  0x10   :  { %86 = vperm.xlu0 %532, %v35_v19  }
  0x14   :  { %497 = vmatpush3.bf16.xpose.msk.msra.mxu0 %vm602_vm1, %v495_v18  ;;  %v36_v18 = vld [vmem:[%s761_s3] sm:$0x1] }
  0x15   :  { %498 = vmatprep.subr.bf16.mxu0 %v558_v2 }
  0x1c   :  { %501 = vmatpush3.bf16.xpose.msk.msra.mxu0 %vm602_vm1, %v499_v22 }
  0x1d   :  { %502 = vmatprep.subr.bf16.mxu0 %v558_v2 }
  0x24   :  { %505 = vmatpush3.bf16.xpose.msk.msra.mxu0 %vm602_vm1, %v503_v25 }
  0x25   :  { %506 = vmatprep.subr.bf16.mxu0 %v558_v2 }
  0x2c   :  { %509 = vmatpush3.bf16.xpose.msk.msra.mxu0 %vm602_vm1, %v507_v28 }
  0x2d   :  { %510 = vmatprep.subr.bf16.mxu0 %v558_v2 }
  0x34   :  { %513 = vmatpush3.bf16.xpose.msk.msra.mxu0 %vm602_vm1, %v511_v31 }
  0x35   :  { %514 = vmatprep.subr.bf16.mxu0 %v558_v2 }
  0x3c   :  { %517 = vmatpush3.bf16.xpose.msk.msra.mxu0 %vm602_vm1, %v515_v34 }
  0x43   :  { %449 = vmatmul.mubr.msk.f32.vlgmr.msra.gmra.mrb[0].mxu0 %vm89_vm0, %v22_v35 }
  0x44   :  { %451 = vmatprep.mubr.msk.f32.mxu0 %vm559_vm2, %v560_v5 }
  0x47   :  { %452 = vmatmul.mubr.msk.f32.gmra.mrb[2].mxu0 %vm89_vm0, %v23_v36 }
  0x48   :  { %454 = vmatprep.mubr.msk.f32.mxu0 %vm559_vm2, %v560_v5 }
  0x4b   :  { %455 = vmatmul.mubr.msk.f32.gmra.mrb[4].mxu0 %vm89_vm0, %v24_v37 }
  0x4c   :  { %457 = vmatprep.mubr.msk.f32.mxu0 %vm559_vm2, %v560_v5 }
  0x4f   :  { %458 = vmatmul.mubr.msk.f32.gmra.mrb[6].mxu0 %vm89_vm0, %v25_v38 }
  0x50   :  { %460 = vmatprep.mubr.msk.f32.mxu0 %vm559_vm2, %v560_v5 }
  0x53   :  { %461 = vmatmul.mubr.msk.f32.gmra.mrb[8].mxu0 %vm89_vm0, %v26_v39 }
  0x54   :  { %463 = vmatprep.mubr.msk.f32.mxu0 %vm559_vm2, %v560_v5 }
  0x57   :  { %464 = vmatmul.mubr.msk.f32.gmra.mrb[10].mxu0 %vm89_vm0, %v27_v40 }
  0x58   :  { %466 = vmatprep.mubr.msk.f32.mxu0 %vm559_vm2, %v560_v5 }
  0x5b   :  { %467 = vmatmul.mubr.msk.f32.gmra.mrb[12].mxu0 %vm89_vm0, %v28_v41 }
  0x83   :  { %v57_v42 = vpop.permute.xlu0 %56 }
  0x84   :  { %v67_v50 = vpop.permute.xlu1 %66 }
  0x87   :  { %v62_v46 = vpop.permute.xlu0 %61 }
  0x88   :  { %v72_v57 = vpop.permute.xlu1 %71 }
  0x8b   :  { %v77_v3 = vpop.permute.xlu0 %76 }
  0x8c   :  { %v82_v6 = vpop.permute.xlu1 %81 }
  0x8f   :  { %v87_v12 = vpop.permute.xlu0 %86 }
 0x116   :  { %v225_v43 = vpop.f32.mrb[0].mxu0 }
 0x117   :  { %v450_v44 = vpop.f32.mrb[1].mxu0  ;;  %v226_v45 = vadd.f32 %v225_v43, %v57_v42 }
 0x119   :  { %v259_v51 = vmax.f32 %v226_v45, 0.0 }
 0x11a   :  { %v230_v47 = vpop.f32.mrb[2].mxu0 }
 0x11b   :  { %v231_v48 = vadd.f32 %v230_v47, %v62_v46  ;;  %v453_v49 = vpop.f32.mrb[3].mxu0 }
 0x11d   :  { %v260_v52 = vmax.f32 %v231_v48, 0.0 }
 0x11e   :  { %v235_v53 = vpop.f32.mrb[4].mxu0 }
 0x11f   :  { %v456_v54 = vpop.f32.mrb[5].mxu0  ;;  %v519_v55 = vpack.c.bf16 %v260_v52, %v259_v51  ;;  %v236_v56 = vadd.f32 %v235_v53, %v67_v50 }
 0x121   :  { %520 = vmatpush3.bf16.msra.mxu1 %v519_v55  ;;  %v261_v61 = vmax.f32 %v236_v56, 0.0 }
 0x122   :  { %v240_v58 = vpop.f32.mrb[6].mxu0  ;;  %521 = vmatprep.subr.bf16.mxu1 %v558_v2 }
 0x123   :  { %v241_v59 = vadd.f32 %v240_v58, %v72_v57  ;;  %v459_v60 = vpop.f32.mrb[7].mxu0 }
 0x125   :  { %v262_v62 = vmax.f32 %v241_v59, 0.0 }
 0x126   :  { %v245_v63 = vpop.f32.mrb[8].mxu0 }
 0x127   :  { %v522_v0 = vpack.c.bf16 %v262_v62, %v261_v61  ;;  %v462_v1 = vpop.f32.mrb[9].mxu0  ;;  %v246_v4 = vadd.f32 %v245_v63, %v77_v3 }
 0x129   :  { %523 = vmatpush3.bf16.msra.mxu1 %v522_v0  ;;  %v263_v10 = vmax.f32 %v246_v4, 0.0 }
 0x12a   :  { %v250_v7 = vpop.f32.mrb[10].mxu0  ;;  %524 = vmatprep.subr.bf16.mxu1 %v558_v2  ;;  %v266_v2 = vstv %s762_s4 }
 0x12b   :  { %v251_v8 = vadd.f32 %v250_v7, %v82_v6  ;;  %v465_v9 = vpop.f32.mrb[11].mxu0 }
 0x12d   :  { %v264_v11 = vmax.f32 %v251_v8, 0.0 }
 0x12e   :  { %v255_v13 = vpop.f32.mrb[12].mxu0 }
 0x12f   :  { %v525_v14 = vpack.c.bf16 %v264_v11, %v263_v10  ;;  %v256_v15 = vadd.f32 %v255_v13, %v87_v12  ;;  %v468_v16 = vpop.f32.mrb[13].mxu0 }
 0x131   :  { %526 = vmatpush3.bf16.msra.mxu1 %v525_v14  ;;  %v265_v17 = vmax.f32 %v256_v15, 0.0 }
 0x132   :  { %481 = vmatprep.subr.mxu1 %v560_v5 }
 0x135   :  { %482 = vmatpush3.msk.msra.mxu1 %vm271_vm3, %v265_v17 }
 0x136   :  { %484 = vmatmul.mubr.msk.f32.vlgmr.msra.gmra.mrb[0].mxu1 %vm267_vm4, %v36_v18 }
 0x209   :  { %v341_v19 = vpop.f32.mrb[0].mxu1 }
 0x20a   :  { %v342_v20 = vadd.f32 %v341_v19, %v266_v2  ;;  %v485_v21 = vpop.f32.mrb[1].mxu1 }
 0x20c   :  { %345 = vst [vmem:[#allocation3] sm:$0x1] %v342_v20 }
 0x20d   :  { %545 = shalt.err (!%p542_p4)
}
 0x20e   :  { %s546_s8 = scalar_lea.hbm %s763_s5, 16 }
 0x20f   :  { %p547_p5 = scmp.ne.s32.totalorder %s763_s5, %s546_s8  ;;  %p550_p6 = scmp.lt.u32.totalorder %s546_s8, %s763_s5 }
 0x211   :  { %p552_p7 = pnand %p550_p6, %p547_p5 }
 0x213   :  { %555 = shalt.err (!%p552_p7)
}
 0x214   :  { %355 = dma.vmem_to_hbm [thread:$0]  %s353_s29, 16, %s763_s5, [#allocation4]  }
 0x215   :  { %556 = dma.done.wait [#allocation4], 16  }
 0x216   :  { %557 = vsyncadd [#allocation4], 4294967280 }
 0x217   :  { %359 = vsyncpa [#allocation4], 1 }

</bundles_post_ra>
